<compile_context>
chip_gen: v7x
topology: tpu7x:2x2x1
jax: 0.10.0
libtpu: 0.0.40
codegen_flags: <defaults>
</compile_context>

<pallas_src>
import functools

import jax
import jax.numpy as jnp
from jax.experimental import pallas as pl
from jax.experimental.pallas import tpu as pltpu

GP_COEF = 5.0
_LANES = 128
_SUBLANES = 8
_TILE = _SUBLANES * _LANES          # 1024-element (8,128) tile
_MAX_BLOCK_ROWS = 8192              # 8192 x 128 f32 = 4 MiB per grad block (8 MiB dbl-buffered)


# ---------------------------------------------------------------------------
# Pallas kernel: tiled sum(grad^2) with per-core vector accumulators
# ---------------------------------------------------------------------------
def _grad_sq_kernel(g_ref, out_ref, *, block_rows, rows_total, blocks_per_core):
    """Grid (num_cores, blocks_per_core): axis 0 "parallel" (v7x 2-TC split), axis 1
    "arbitrary" (reduction).  out_ref is one (8,128) f32 block per core, revisited
    across the reduction axis (resident VMEM accumulator)."""
    p = pl.program_id(0)
    i = pl.program_id(1)
    b = p * blocks_per_core + i          # logical block id (>= num_blocks for dup cells)

    @pl.when(i == 0)
    def _init():
        out_ref[...] = jnp.zeros_like(out_ref)

    # In-kernel widening cast: the gradient stays in its native dtype in HBM.
    g = g_ref[...].astype(jnp.float32)
    block_start = b * block_rows
    is_full = block_start + block_rows <= rows_total

    @pl.when(is_full)
    def _full_block():
        sq = g * g
        # (block_rows,128) -> (block_rows/8, 8, 128), accumulate vreg-wise (pure VPU,
        # hides entirely under the block DMA).
        out_ref[...] += jnp.sum(sq.reshape(-1, _SUBLANES, _LANES), axis=0)

    @pl.when(jnp.logical_not(is_full))
    def _masked_block():
        # Last partial block, or a duplicated (index-clamped) grid cell when the block
        # count is odd: mask by the LOGICAL row index so out-of-range / re-read rows
        # contribute exactly zero.  Runs on at most 2 blocks per call.
        row = jax.lax.broadcasted_iota(jnp.int32, (block_rows, _LANES), 0)
        valid = row < (rows_total - block_start)
        gm = jnp.where(valid, g, 0.0)
        out_ref[...] += jnp.sum((gm * gm).reshape(-1, _SUBLANES, _LANES), axis=0)


# ---------------------------------------------------------------------------
# Wrapper: sum(grad_real**2) in f32
# ---------------------------------------------------------------------------
def _grad_sq_sum(grad_real):
    flat = grad_real.reshape(-1)                       # layout-preserving, no copy
    total = flat.shape[0]
    main = (total // _TILE) * _TILE                    # multiple of 1024 -> rows % 8 == 0

    # <1024-element ragged tail: reduce with plain jnp (zero extra HBM traffic vs. the
    # old full-tensor concatenate+pad copy).
    tail_sq = jnp.zeros((), jnp.float32)
    if main != total:
        tail = flat[main:].astype(jnp.float32)
        tail_sq = jnp.sum(tail * tail)
    if main == 0:
        return tail_sq                                 # gradient smaller than one tile

    g2d = (flat if main == total else flat[:main]).reshape(-1, _LANES)
    rows = g2d.shape[0]                                # multiple of 8
    block_rows = min(_MAX_BLOCK_ROWS, rows)            # blocks never exceed the array
    num_blocks = pl.cdiv(rows, block_rows)
    num_cores = 2 if num_blocks >= 2 else 1            # v7x: shard row-tiles over both TCs
    blocks_per_core = pl.cdiv(num_blocks, num_cores)

    def g_index(p, i):
        # Clamp so duplicated grid cells (odd block count) stay in bounds; the kernel
        # masks their contribution to zero via the logical block id.  Consecutive equal
        # block indices are not re-fetched by the pipeline.
        return (jnp.minimum(p * blocks_per_core + i, num_blocks - 1), 0)

    kernel = functools.partial(
        _grad_sq_kernel,
        block_rows=block_rows, rows_total=rows, blocks_per_core=blocks_per_core)

    cost = pl.CostEstimate(
        flops=2 * main,
        transcendentals=0,
        bytes_accessed=main * g2d.dtype.itemsize + num_cores * _TILE * 4)

    partials = pl.pallas_call(
        kernel,
        out_shape=jax.ShapeDtypeStruct((num_cores, _SUBLANES, _LANES), jnp.float32),
        grid=(num_cores, blocks_per_core),
        in_specs=[pl.BlockSpec((block_rows, _LANES), g_index)],
        out_specs=pl.BlockSpec((None, _SUBLANES, _LANES), lambda p, i: (p, 0, 0)),
        compiler_params=pltpu.CompilerParams(
            dimension_semantics=("parallel", "arbitrary"),
            vmem_limit_bytes=32 * 1024 * 1024),
        cost_estimate=cost,
    )(g2d)

    # Final cross-lane reduce of (num_cores, 8, 128) partials: tiny, fused by XLA.
    return jnp.sum(partials) + tail_sq


# ---------------------------------------------------------------------------
# DiscriminatorLoss forward
# ---------------------------------------------------------------------------
def discriminator_loss(real_batch, discr_real_pred, discr_fake_pred, d_regularize,
                       grad_real=None, gp_coef=GP_COEF):
    """grad_real must be d(sum(discr_real_pred))/d(real_batch) when d_regularize=True
    (produced with jax.grad in the caller, mirroring torch.autograd.grad in make_r1_gp)."""
    # Tiny prediction tensors: plain jnp (fuses into the surrounding XLA graph; a
    # dedicated Pallas launch + resident VMEM buffers cost more than they save).
    real_loss = jnp.mean(jax.nn.softplus(-discr_real_pred.astype(jnp.float32)))
    fake_loss = jnp.mean(jax.nn.softplus(discr_fake_pred.astype(jnp.float32)))

    if d_regularize:
        if grad_real is None:
            raise ValueError("grad_real is required when d_regularize=True")
        # TODO(synk): the torch.autograd.grad call itself has no Pallas equivalent; only
        # the HBM-bound reduction of the returned gradient runs in the Pallas kernel.
        n_batch = grad_real.shape[0]
        grad_penalty = _grad_sq_sum(grad_real) / jnp.float32(n_batch)
    else:
        grad_penalty = jnp.zeros((), jnp.float32)

    d_loss = real_loss + fake_loss + jnp.float32(gp_coef) * grad_penalty
    metrics = {
        "disc_loss": d_loss,
        "real_loss": real_loss,
        "fake_loss": fake_loss,
        "grad_penalty_loss": grad_penalty,
    }
    return d_loss, metrics


# ---------------------------------------------------------------------------
# Driver
# ---------------------------------------------------------------------------
if __name__ == "__main__":
    key = jax.random.PRNGKey(0)
    k1, k2, k3, k4, k5 = jax.random.split(key, 5)

    N, C, H, W = 2, 4, 16, 16  # layout: NCHW
    real_batch = jax.random.normal(k1, (N, C, H, W), jnp.float32)
    fake_batch = jax.random.normal(k2, (N, C, H, W), jnp.float32)

    # Deterministic synthetic "discriminator" (linear head) so the R1 gradient of
    # discr_real_pred w.r.t. real_batch is well defined.
    w = jax.random.normal(k3, (C * H * W, 1), jnp.float32) * 0.01
    b = jnp.zeros((1,), jnp.float32)

    def discr(x):
        return x.reshape(x.shape[0], -1) @ w + b  # (N, 1)

    discr_real_pred = discr(real_batch)
    discr_fake_pred = discr(fake_batch)

    # Autograd portion of make_r1_gp (d sum(D(x)) / dx) -- JAX AD glue, not kernel work.
    grad_real = jax.grad(lambda x: jnp.sum(discr(x)))(real_batch)

    d_loss, metrics = discriminator_loss(
        real_batch, discr_real_pred, discr_fake_pred, True, grad_real=grad_real
    )
    jax.block_until_ready(d_loss)

    # Reference (plain jnp) for the same forward semantics.
    ref_real = jnp.mean(jax.nn.softplus(-discr_real_pred))
    ref_fake = jnp.mean(jax.nn.softplus(discr_fake_pred))
    ref_gp = jnp.mean(jnp.sum(grad_real.reshape(N, -1) ** 2, axis=1))
    ref_loss = ref_real + ref_fake + GP_COEF * ref_gp
    assert jnp.allclose(d_loss, ref_loss, rtol=1e-5, atol=1e-5), (d_loss, ref_loss)
    assert jnp.allclose(metrics["real_loss"], ref_real, rtol=1e-5, atol=1e-5)
    assert jnp.allclose(metrics["fake_loss"], ref_fake, rtol=1e-5, atol=1e-5)
    assert jnp.allclose(metrics["grad_penalty_loss"], ref_gp, rtol=1e-5, atol=1e-5)

    # d_regularize = False branch (no Pallas launch).
    d_loss2, metrics2 = discriminator_loss(
        real_batch, discr_real_pred, discr_fake_pred, False
    )
    jax.block_until_ready(d_loss2)
    assert jnp.allclose(d_loss2, ref_real + ref_fake, rtol=1e-5, atol=1e-5)
    assert jnp.allclose(metrics2["grad_penalty_loss"], 0.0)

    # Ragged gradient shapes:
    #   (2,3,5,7)       -> 210 elems: smaller than one tile, pure jnp tail path.
    #   (2,1_310_800)   -> 2.62M elems: 3 blocks (odd -> duplicated masked cell),
    #                      partial last block (in-kernel row mask), 160-element jnp tail.
    ragged_cases = [
        (jax.random.normal(k4, (2, 3, 5, 7), jnp.float32), 1e-5),
        (jax.random.normal(k5, (2, 1_310_800), jnp.float32), 1e-4),
    ]
    for g, tol in ragged_cases:
        _, m = discriminator_loss(
            real_batch, discr_real_pred, discr_fake_pred, True, grad_real=g
        )
        jax.block_until_ready(m["grad_penalty_loss"])
        ref = jnp.mean(jnp.sum(g.reshape(g.shape[0], -1) ** 2, axis=1))
        assert jnp.allclose(m["grad_penalty_loss"], ref, rtol=tol, atol=tol), (
            m["grad_penalty_loss"], ref)

    print("KERNEL_OK")
</pallas_src>

<mosaic_0001>
module attributes {stable_mosaic.version = 11 : i64} {
  func.func @_grad_sq_kernel(%arg0: i32, %arg1: i32, %arg2: memref<16x128xf32, #tpu.memory_space<vmem>>, %arg3: memref<1x8x128xf32, #tpu.memory_space<vmem>>) attributes {dimension_semantics = [#tpu.dimension_semantics<parallel>, #tpu.dimension_semantics<arbitrary>], iteration_bounds = array<i64: 1, 1>, scalar_prefetch = 0 : i64, scratch_operands = 0 : i64, tpu.core_type = #tpu.core_type<tc>, window_params = [{transform_indices = @transform_0, window_bounds = array<i64: 16, 128>}, {transform_indices = @transform_1, window_bounds = array<i64: 1, 8, 128>}]} {
    %c1_i32 = arith.constant 1 : i32
    %0 = arith.muli %arg0, %c1_i32 : i32
    %1 = arith.addi %0, %arg1 : i32
    %c0_i32 = arith.constant 0 : i32
    %2 = arith.cmpi eq, %arg1, %c0_i32 : i32
    %3 = arith.extui %2 : i1 to i32
    %c0_i32_0 = arith.constant 0 : i32
    %4 = arith.cmpi ne, %3, %c0_i32_0 : i32
    scf.if %4 {
      %cst = arith.constant 0.000000e+00 : f32
      %14 = vector.broadcast %cst : f32 to vector<8x128xf32>
      %c0_6 = arith.constant 0 : index
      %c0_7 = arith.constant 0 : index
      %c0_8 = arith.constant 0 : index
      %15 = vector.load %arg3[%c0_6, %c0_7, %c0_8] : memref<1x8x128xf32, #tpu.memory_space<vmem>>, vector<1x8x128xf32>
      %16 = vector.shape_cast %15 : vector<1x8x128xf32> to vector<8x128xf32>
      %17 = vector.shape_cast %14 : vector<8x128xf32> to vector<1x8x128xf32>
      tpu.vector_store %arg3[%c0_6, %c0_7, %c0_8], %17 {strides = array<i32>} : memref<1x8x128xf32, #tpu.memory_space<vmem>>, vector<1x8x128xf32>,
    } else {
    }
    %c0 = arith.constant 0 : index
    %c0_1 = arith.constant 0 : index
    %5 = vector.load %arg2[%c0, %c0_1] : memref<16x128xf32, #tpu.memory_space<vmem>>, vector<16x128xf32>
    %c16_i32 = arith.constant 16 : i32
    %6 = arith.muli %1, %c16_i32 : i32
    %c16_i32_2 = arith.constant 16 : i32
    %7 = arith.addi %6, %c16_i32_2 : i32
    %c16_i32_3 = arith.constant 16 : i32
    %8 = arith.cmpi sle, %7, %c16_i32_3 : i32
    %9 = arith.extui %8 : i1 to i32
    %c0_i32_4 = arith.constant 0 : i32
    %10 = arith.cmpi ne, %9, %c0_i32_4 : i32
    scf.if %10 {
      %14 = arith.mulf %5, %5 : vector<16x128xf32>
      %c0_6 = arith.constant 0 : index
      %c0_7 = arith.constant 0 : index
      %c0_8 = arith.constant 0 : index
      %15 = vector.load %arg3[%c0_6, %c0_7, %c0_8] : memref<1x8x128xf32, #tpu.memory_space<vmem>>, vector<1x8x128xf32>
      %16 = vector.shape_cast %15 : vector<1x8x128xf32> to vector<8x128xf32>
      %17 = vector.shape_cast %14 : vector<16x128xf32> to vector<2x8x128xf32>
      %cst = arith.constant dense<0.000000e+00> : vector<8x128xf32>
      %18 = vector.multi_reduction <add>, %17, %cst [0] : vector<2x8x128xf32> to vector<8x128xf32>
      %19 = arith.addf %16, %18 : vector<8x128xf32>
      %c0_9 = arith.constant 0 : index
      %c0_10 = arith.constant 0 : index
      %c0_11 = arith.constant 0 : index
      %20 = vector.load %arg3[%c0_9, %c0_10, %c0_11] : memref<1x8x128xf32, #tpu.memory_space<vmem>>, vector<1x8x128xf32>
      %21 = vector.shape_cast %20 : vector<1x8x128xf32> to vector<8x128xf32>
      %22 = vector.shape_cast %19 : vector<8x128xf32> to vector<1x8x128xf32>
      tpu.vector_store %arg3[%c0_9, %c0_10, %c0_11], %22 {strides = array<i32>} : memref<1x8x128xf32, #tpu.memory_space<vmem>>, vector<1x8x128xf32>,
    } else {
    }
    %true = arith.constant true
    %11 = arith.xori %8, %true : i1
    %12 = arith.extui %11 : i1 to i32
    %c0_i32_5 = arith.constant 0 : i32
    %13 = arith.cmpi ne, %12, %c0_i32_5 : i32
    scf.if %13 {
      %14 = tpu.iota {dimensions = array<i32: 0>} : vector<16x128xi32>
      %c16_i32_6 = arith.constant 16 : i32
      %15 = arith.subi %c16_i32_6, %6 : i32
      %16 = vector.broadcast %15 : i32 to vector<16x128xi32>
      %17 = arith.cmpi slt, %14, %16 : vector<16x128xi32>
      %cst = arith.constant 0.000000e+00 : f32
      %18 = vector.broadcast %cst : f32 to vector<16x128xf32>
      %19 = arith.select %17, %5, %18 : vector<16x128xi1>, vector<16x128xf32>
      %c0_7 = arith.constant 0 : index
      %c0_8 = arith.constant 0 : index
      %c0_9 = arith.constant 0 : index
      %20 = vector.load %arg3[%c0_7, %c0_8, %c0_9] : memref<1x8x128xf32, #tpu.memory_space<vmem>>, vector<1x8x128xf32>
      %21 = vector.shape_cast %20 : vector<1x8x128xf32> to vector<8x128xf32>
      %22 = arith.mulf %19, %19 : vector<16x128xf32>
      %23 = vector.shape_cast %22 : vector<16x128xf32> to vector<2x8x128xf32>
      %cst_10 = arith.constant dense<0.000000e+00> : vector<8x128xf32>
      %24 = vector.multi_reduction <add>, %23, %cst_10 [0] : vector<2x8x128xf32> to vector<8x128xf32>
      %25 = arith.addf %21, %24 : vector<8x128xf32>
      %c0_11 = arith.constant 0 : index
      %c0_12 = arith.constant 0 : index
      %c0_13 = arith.constant 0 : index
      %26 = vector.load %arg3[%c0_11, %c0_12, %c0_13] : memref<1x8x128xf32, #tpu.memory_space<vmem>>, vector<1x8x128xf32>
      %27 = vector.shape_cast %26 : vector<1x8x128xf32> to vector<8x128xf32>
      %28 = vector.shape_cast %25 : vector<8x128xf32> to vector<1x8x128xf32>
      tpu.vector_store %arg3[%c0_11, %c0_12, %c0_13], %28 {strides = array<i32>} : memref<1x8x128xf32, #tpu.memory_space<vmem>>, vector<1x8x128xf32>,
    } else {
    }
    return
  }
  func.func @transform_0(%arg0: i32, %arg1: i32) -> (i32, i32) {
    %c1_i32 = arith.constant 1 : i32
    %0 = arith.muli %arg0, %c1_i32 : i32
    %1 = arith.addi %0, %arg1 : i32
    %c0_i32 = arith.constant 0 : i32
    %2 = arith.minsi %1, %c0_i32 : i32
    %c0_i32_0 = arith.constant 0 : i32
    %c0_i32_1 = arith.constant 0 : i32
    return %2, %c0_i32_0 : i32, i32
  }
  func.func @transform_1(%arg0: i32, %arg1: i32) -> (i32, i32, i32) {
    %c0_i32 = arith.constant 0 : i32
    %c0_i32_0 = arith.constant 0 : i32
    %c0_i32_1 = arith.constant 0 : i32
    return %arg0, %c0_i32, %c0_i32_0 : i32, i32, i32
  }
}

</mosaic_0001>

<bundles_post_ra>
// kernel: tpu_custom_call.1
= control target key start
LH: loop header
LB: loop body
LE: loop exit
PB: predicated region body
PF: predicated region fallthrough
CT: control target
= control target key end

     0   :  { %6 = vsyncpa [#allocation3], 0  ;;  %s180_s0 = inlined_call_operand.hbm [shape: f32[16,128], index: 0, kind: input, shape index: {}]   ;;  %s181_s1 = inlined_call_operand.hbm [shape: f32[1,8,128], index: 1, kind: output, shape index: {}]  }
   0x1   :  { %7 = vsyncpa [#allocation4], 0  ;;  %s142_s6 = smov [#allocation2]   ;;  %s94_s10 = scalar_lea.hbm %s180_s0, 256 }
   0x2   :  { %s19_s7 = sshll.u32 %s142_s6, 4  ;;  %p95_p0 = scmp.ne.s32.totalorder %s180_s0, %s94_s10  ;;  %s20_s7 = int_to_ptr.vmem [resolvable:$true] %s19_s7 }
   0x3   :  { %p98_p1 = scmp.lt.u32.totalorder %s94_s10, %s180_s0 }
   0x5   :  { %p100_p2 = pnand %p98_p1, %p95_p0 }
   0x7   :  { %103 = shalt.err (!%p100_p2)
}
   0x8   :  { %s104_s15 = scalar_lea.vmem %s20_s7, 256  ;;  %p109_p4 = scmp.lt.s32.totalorder %s20_s7, %s20_s7 }
   0x9   :  { %p105_p3 = scmp.ne.s32.totalorder %s20_s7, %s104_s15  ;;  %p110_p5 = scmp.lt.s32.totalorder %s104_s15, %s104_s15 }
   0xb   :  { %p111_p6 = por %p110_p5, %p109_p4 }
   0xd   :  { %p112_p7 = pnand %p111_p6, %p105_p3 }
   0xf   :  { %115 = shalt.err (!%p112_p7)
}
  0x10   :  { %s143_s16 = smov 128   ;;  %s144_s17 = smov 8  }
  0x11   :  { %25 = dma.hbm_to_vmem [thread:$0]  %s180_s0, 256, %s20_s7, [#allocation3], %s143_s16, %s143_s16, %s144_s17  }
  0x12   :  { %138 = dma.done.wait [#allocation3], 256  }
  0x13   :  { %139 = vsyncadd [#allocation3], 4294967040  ;;  %v39_v0 = vld [vmem:[#allocation2] sm:$0xff]  ;;  %v40_v1 = vld [vmem:[#allocation2 + $0x8] sm:$0xff]  ;;  %s145_s20 = smov [#allocation5]  }
  0x14   :  { %v47_v2 = vmul.f32 %v39_v0, %v39_v0  ;;  %v48_v3 = vmul.f32 %v40_v1, %v40_v1  ;;  %s78_s21 = sshll.u32 %s145_s20, 4  ;;  %s79_s21 = int_to_ptr.vmem [resolvable:$true] %s78_s21 }
  0x15   :  { %s116_s22 = scalar_lea.vmem %s79_s21, 128  ;;  %p121_p9 = scmp.lt.s32.totalorder %s79_s21, %s79_s21 }
  0x16   :  { %v50_v4 = vadd.f32 %v48_v3, %v47_v2  ;;  %p117_p8 = scmp.ne.s32.totalorder %s79_s21, %s116_s22  ;;  %p122_p10 = scmp.lt.s32.totalorder %s116_s22, %s116_s22 }
  0x18   :  { %52 = vst [vmem:[#allocation5] sm:$0xff] %v50_v4  ;;  %p123_p11 = por %p122_p10, %p121_p9 }
  0x1a   :  { %p124_p12 = pnand %p123_p11, %p117_p8 }
  0x1c   :  { %127 = shalt.err (!%p124_p12)
}
  0x1d   :  { %s128_s24 = scalar_lea.hbm %s181_s1, 128 }
  0x1e   :  { %p129_p13 = scmp.ne.s32.totalorder %s181_s1, %s128_s24  ;;  %p132_p0 = scmp.lt.u32.totalorder %s128_s24, %s181_s1 }
  0x20   :  { %p134_p1 = pnand %p132_p0, %p129_p13 }
  0x22   :  { %137 = shalt.err (!%p134_p1)
}
  0x23   :  { %81 = dma.vmem_to_hbm [thread:$0]  %s79_s21, 128, %s181_s1, [#allocation4]  }
  0x24   :  { %140 = dma.done.wait [#allocation4], 128  }
  0x25   :  { %141 = vsyncadd [#allocation4], 4294967168 }
  0x26   :  { %85 = vsyncpa [#allocation3], 1 }
  0x27   :  { %86 = vsyncpa [#allocation4], 1 }

</bundles_post_ra>
